<compile_context>
chip_gen: v7x
topology: tpu7x:2x2x1
jax: 0.10.0
libtpu: 0.0.40
codegen_flags: <defaults>
</compile_context>

<pallas_src>
import functools
import math

import jax
import jax.numpy as jnp
from jax.experimental import pallas as pl
from jax.experimental.pallas import tpu as pltpu


def _attention_kernel(hproj_ref, enc_ref, we_ref, v_ref, out_ref, *,
                      n_s, ts, s_valid):
    """One (batch-block, seq-tile) grid step.

    hproj_ref : (TB, H)      f32  -- hidden @ W[:, :H].T + b (wrapper-computed)
    enc_ref   : (TB, TS, H)       -- encoder_outputs tile (bf16 by default)
    we_ref    : (H, H)            -- W[:, H:].T, same dtype as enc
    v_ref     : (1, H)       f32
    out_ref   : (TB, S_pad)  f32  -- VMEM-resident across the seq grid axis
    """
    TB, TS, H = enc_ref.shape
    si = pl.program_id(1)

    # Encoder projection on the MXU with f32 accumulation.  Collapsing the
    # leading (TB, TS) dims leaves the lane dim untouched; all tiled paths use
    # TS in {128, 256, 512}, so the reshape is a free re-view, not a copy.
    enc2d = enc_ref[...].reshape(TB * TS, H)
    eproj = jnp.dot(enc2d, we_ref[...],
                    preferred_element_type=jnp.float32).reshape(TB, TS, H)

    # energy = relu(W_h h + W_e e + b); the hidden half + bias live in hproj.
    energy = jnp.maximum(eproj + hproj_ref[...][:, None, :], 0.0)

    # scores[b, s] = sum_h v[h] * energy[b, s, h]   (VPU mul + XLU lane reduce,
    # lands directly in the lane-dense (TB, TS) layout of the output)
    scores = jnp.sum(energy * v_ref[...], axis=-1)              # (TB, TS) f32

    if n_s == 1:
        # Whole sequence in one tile: fused softmax over the row, single store.
        m = jnp.max(scores, axis=-1, keepdims=True)
        e = jnp.exp(scores - m)
        out_ref[...] = (e / jnp.sum(e, axis=-1, keepdims=True)).astype(out_ref.dtype)
    else:
        # Sequence is tiled: stash the raw score tile into the VMEM-resident
        # output block, then run the softmax over the full row on the last
        # seq step.  TS is a multiple of 128, so the store stays lane-aligned.
        start = pl.multiple_of(si * ts, ts)
        out_ref[:, pl.ds(start, ts)] = scores

        @pl.when(si == n_s - 1)
        def _finalize():
            all_scores = out_ref[...]                           # (TB, S_pad)
            if s_valid < n_s * ts:                              # mask seq padding
                col = jax.lax.broadcasted_iota(jnp.int32, all_scores.shape, 1)
                all_scores = jnp.where(col < s_valid, all_scores, -jnp.inf)
            m = jnp.max(all_scores, axis=-1, keepdims=True)
            e = jnp.exp(all_scores - m)
            out_ref[...] = (e / jnp.sum(e, axis=-1, keepdims=True)).astype(out_ref.dtype)


def _choose_tiles(B, S, H):
    """Pick (TB, TS) from a VMEM budget.

    Keep each in-kernel f32 temporary (eproj / energy, shape (TB, TS, H))
    around <= ~4 MiB so that, with ~3 live temporaries plus the double-buffered
    bf16 enc block and the weight tile, a grid step stays well inside v7x's
    64 MiB VMEM.  TB*TS is then roughly 2**20 / H rows, which keeps the MXU M
    dimension full and amortizes per-step pipeline overhead.
    """
    ELEMS = 1 << 20                                   # ~4 MiB of f32 per temporary

    # --- sequence tile ---
    if 8 * S * H <= ELEMS or S <= 128:
        ts = S                                        # single sequence tile
        # TODO(synk): for extreme H (8*S*H >> ELEMS with S <= 128) an H-tile
        # axis would be needed to respect the budget; not tiled here.
    else:
        ts = 512                                      # lane-aligned (and mult of 16 for bf16)
        while ts > 128 and 8 * ts * H > ELEMS:
            ts //= 2
        if ts >= S:
            ts = S
    n_s = -(-S // ts)
    s_pad = n_s * ts

    # --- batch tile ---
    tb_raw = ELEMS // max(1, ts * H)
    tb = max(8, min(1024, (tb_raw // 8) * 8))
    if tb >= B:
        tb, b_pad = B, B                              # block == full dim is always legal
    else:
        b_pad = -(-B // tb) * tb                      # keeps >1 parallel batch steps for
                                                      # large B (feeds both v7x TCs)
    return tb, b_pad, ts, s_pad, n_s


def attention_forward(hidden, encoder_outputs, w, b, v, *,
                      matmul_dtype=jnp.bfloat16):
    """hidden: [B, H], encoder_outputs: [B, S, H] -> attention weights [B, 1, S]."""
    B, H = hidden.shape
    _, S, _ = encoder_outputs.shape

    # ---- trace-time prep (plain XLA) ----
    # Linear(2H -> H) on cat([hidden, enc]) splits exactly into
    #   hidden @ W[:, :H].T + enc @ W[:, H:].T + b.
    # The hidden half is computed once per batch row here and passed in.
    w_e = w[:, H:].T.astype(matmul_dtype)                              # (H, H)
    hproj = (jnp.dot(hidden, w[:, :H].T,
                     precision=jax.lax.Precision.HIGHEST) + b).astype(jnp.float32)
    v2 = v.reshape(1, H).astype(jnp.float32)
    # bf16 halves the dominant HBM stream on all TPU generations; the cast is a
    # no-op if the caller already keeps encoder_outputs in bf16 (recommended —
    # in a decoder loop enc is reused every step, so cast it once outside).
    enc = encoder_outputs.astype(matmul_dtype)

    tb, b_pad, ts, s_pad, n_s = _choose_tiles(B, S, H)

    if b_pad != B:
        hproj = jnp.pad(hproj, ((0, b_pad - B), (0, 0)))
        enc = jnp.pad(enc, ((0, b_pad - B), (0, 0), (0, 0)))
    if s_pad != S:
        enc = jnp.pad(enc, ((0, 0), (0, s_pad - S), (0, 0)))

    kernel = functools.partial(_attention_kernel, n_s=n_s, ts=ts, s_valid=S)

    out = pl.pallas_call(
        kernel,
        out_shape=jax.ShapeDtypeStruct((b_pad, s_pad), jnp.float32),
        grid_spec=pltpu.PrefetchScalarGridSpec(
            num_scalar_prefetch=0,
            grid=(b_pad // tb, n_s),
            in_specs=[
                pl.BlockSpec((tb, H), lambda i, j: (i, 0)),          # hproj
                pl.BlockSpec((tb, ts, H), lambda i, j: (i, j, 0)),   # enc tile
                pl.BlockSpec((H, H), lambda i, j: (0, 0)),           # W_e^T
                # TODO(synk): pipeline_mode=pl.Buffered(1) on the constant
                # weight spec would drop its second VMEM buffer for large H.
                pl.BlockSpec((1, H), lambda i, j: (0, 0)),           # v
            ],
            # Output block is VMEM-resident across the sequence axis (same
            # block index for every j); the softmax runs on it at the last j.
            out_specs=pl.BlockSpec((tb, s_pad), lambda i, j: (i, 0)),
        ),
        compiler_params=pltpu.CompilerParams(
            # Batch axis can shard across v7x's two TensorCores; the seq axis
            # carries the resident output block so it stays sequential.
            dimension_semantics=("parallel", "arbitrary"),
            # Raise the scoped-VMEM limit (16 MiB default on v5e, 32 MiB on
            # v6e/v7x); 48 MiB still leaves headroom under v7x's 64 MiB.
            vmem_limit_bytes=48 * 1024 * 1024,
        ),
    )(hproj, enc, w_e, v2)

    # Drop batch/seq padding, add the size-1 "query" axis (layout plumbing).
    return out[:B, None, :S]


def _reference(hidden, encoder_outputs, w, b, v):
    """Pure-JAX replica of the PyTorch forward (f32, highest precision)."""
    B, S, H = encoder_outputs.shape
    h = jnp.broadcast_to(hidden[:, None, :], (B, S, H))
    cat = jnp.concatenate([h, encoder_outputs], axis=2)                   # (B, S, 2H)
    energy = jax.nn.relu(
        jnp.einsum('bsk,hk->bsh', cat, w,
                   precision=jax.lax.Precision.HIGHEST) + b)              # (B, S, H)
    scores = jnp.einsum('bsh,h->bs', energy, v,
                        precision=jax.lax.Precision.HIGHEST)              # (B, S)
    return jax.nn.softmax(scores, axis=1)[:, None, :]                     # (B, 1, S)


if __name__ == "__main__":
    B, S, H = 2, 8, 32

    key = jax.random.PRNGKey(0)
    k1, k2, k3, k4, k5 = jax.random.split(key, 5)

    # Deterministic parameter init (same shapes / init ranges as the module).
    stdv_lin = 1.0 / math.sqrt(2 * H)
    w = jax.random.uniform(k1, (H, 2 * H), jnp.float32, -stdv_lin, stdv_lin)
    b = jax.random.uniform(k2, (H,), jnp.float32, -stdv_lin, stdv_lin)
    stdv_v = 1.0 / math.sqrt(H)
    v = jax.random.uniform(k3, (H,), jnp.float32, -stdv_v, stdv_v)

    hidden = jax.random.normal(k4, (B, H), jnp.float32)
    encoder_outputs = jax.random.normal(k5, (B, S, H), jnp.float32)

    out = attention_forward(hidden, encoder_outputs, w, b, v)
    out = jax.block_until_ready(out)

    ref = _reference(hidden, encoder_outputs, w, b, v)
    assert out.shape == (B, 1, S), out.shape
    # bf16 MXU inputs (default) -> compare against the f32 reference with a
    # bf16-level tolerance.  Normalization itself is an exact f32 divide.
    assert jnp.allclose(out, ref, atol=1e-2, rtol=1e-2), "mismatch vs reference"
    assert jnp.allclose(jnp.sum(out, axis=-1), 1.0, atol=1e-5), "softmax not normalized"

    print("KERNEL_OK")
</pallas_src>

<mosaic_0001>
module attributes {stable_mosaic.version = 11 : i64} {
  func.func @_attention_kernel(%arg0: i32, %arg1: i32, %arg2: memref<2x32xf32, #tpu.memory_space<vmem>>, %arg3: memref<2x8x32xbf16, #tpu.memory_space<vmem>>, %arg4: memref<32x32xbf16, #tpu.memory_space<vmem>>, %arg5: memref<1x32xf32, #tpu.memory_space<vmem>>, %arg6: memref<2x8xf32, #tpu.memory_space<vmem>>) attributes {dimension_semantics = [#tpu.dimension_semantics<parallel>, #tpu.dimension_semantics<arbitrary>], iteration_bounds = array<i64: 1, 1>, scalar_prefetch = 0 : i64, scratch_operands = 0 : i64, tpu.core_type = #tpu.core_type<tc>, window_params = [{transform_indices = @transform_0, window_bounds = array<i64: 2, 32>}, {transform_indices = @transform_1, window_bounds = array<i64: 2, 8, 32>}, {pipeline_mode = #tpu.pipeline_mode<synchronous>, transform_indices = @transform_2, window_bounds = array<i64: 32, 32>}, {pipeline_mode = #tpu.pipeline_mode<synchronous>, transform_indices = @transform_3, window_bounds = array<i64: 1, 32>}, {transform_indices = @transform_4, window_bounds = array<i64: 2, 8>}]} {
    %c0 = arith.constant 0 : index
    %c0_0 = arith.constant 0 : index
    %c0_1 = arith.constant 0 : index
    %0 = vector.load %arg3[%c0, %c0_0, %c0_1] : memref<2x8x32xbf16, #tpu.memory_space<vmem>>, vector<2x8x32xbf16>
    %1 = vector.shape_cast %0 : vector<2x8x32xbf16> to vector<16x32xbf16>
    %c0_2 = arith.constant 0 : index
    %c0_3 = arith.constant 0 : index
    %2 = vector.load %arg4[%c0_2, %c0_3] : memref<32x32xbf16, #tpu.memory_space<vmem>>, vector<32x32xbf16>
    %cst = arith.constant dense<0.000000e+00> : vector<16x32xf32>
    %3 = tpu.matmul %1, %2, %cst {dimension_numbers = #tpu.dot_dimension_numbers<[1], [0], [0], [1], [0, 0, 1, 1], [], []>} : vector<16x32xbf16>, vector<32x32xbf16>, vector<16x32xf32> -> vector<16x32xf32>
    %4 = vector.shape_cast %3 : vector<16x32xf32> to vector<2x8x32xf32>
    %c0_4 = arith.constant 0 : index
    %c0_5 = arith.constant 0 : index
    %5 = vector.load %arg2[%c0_4, %c0_5] : memref<2x32xf32, #tpu.memory_space<vmem>>, vector<2x32xf32>
    %6 = vector.shape_cast %5 : vector<2x32xf32> to vector<2x1x32xf32>
    %7 = vector.broadcast %6 : vector<2x1x32xf32> to vector<2x8x32xf32>
    %8 = arith.addf %4, %7 : vector<2x8x32xf32>
    %cst_6 = arith.constant 0.000000e+00 : f32
    %9 = vector.broadcast %cst_6 : f32 to vector<2x8x32xf32>
    %10 = arith.maximumf %8, %9 : vector<2x8x32xf32>
    %c0_7 = arith.constant 0 : index
    %c0_8 = arith.constant 0 : index
    %11 = vector.load %arg5[%c0_7, %c0_8] : memref<1x32xf32, #tpu.memory_space<vmem>>, vector<1x32xf32>
    %12 = vector.shape_cast %11 : vector<1x32xf32> to vector<1x1x32xf32>
    %13 = vector.broadcast %12 : vector<1x1x32xf32> to vector<2x8x32xf32>
    %14 = arith.mulf %10, %13 : vector<2x8x32xf32>
    %cst_9 = arith.constant dense<0.000000e+00> : vector<2x8xf32>
    %15 = vector.multi_reduction <add>, %14, %cst_9 [2] : vector<2x8x32xf32> to vector<2x8xf32>
    %cst_10 = arith.constant dense<0xFF800000> : vector<2xf32>
    %16 = vector.multi_reduction <maximumf>, %15, %cst_10 [1] : vector<2x8xf32> to vector<2xf32>
    %17 = vector.shape_cast %16 : vector<2xf32> to vector<2x1xf32>
    %18 = vector.broadcast %17 : vector<2x1xf32> to vector<2x8xf32>
    %19 = arith.subf %15, %18 : vector<2x8xf32>
    %20 = math.exp %19 : vector<2x8xf32>
    %cst_11 = arith.constant dense<0.000000e+00> : vector<2xf32>
    %21 = vector.multi_reduction <add>, %20, %cst_11 [1] : vector<2x8xf32> to vector<2xf32>
    %22 = vector.shape_cast %21 : vector<2xf32> to vector<2x1xf32>
    %23 = vector.broadcast %22 : vector<2x1xf32> to vector<2x8xf32>
    %24 = arith.divf %20, %23 : vector<2x8xf32>
    %c0_12 = arith.constant 0 : index
    %c0_13 = arith.constant 0 : index
    %25 = vector.load %arg6[%c0_12, %c0_13] : memref<2x8xf32, #tpu.memory_space<vmem>>, vector<2x8xf32>
    tpu.vector_store %arg6[%c0_12, %c0_13], %24 {strides = array<i32>} : memref<2x8xf32, #tpu.memory_space<vmem>>, vector<2x8xf32>,
    return
  }
  func.func @transform_0(%arg0: i32, %arg1: i32) -> (i32, i32) {
    %c0_i32 = arith.constant 0 : i32
    %c0_i32_0 = arith.constant 0 : i32
    return %arg0, %c0_i32 : i32, i32
  }
  func.func @transform_1(%arg0: i32, %arg1: i32) -> (i32, i32, i32) {
    %c0_i32 = arith.constant 0 : i32
    %c0_i32_0 = arith.constant 0 : i32
    return %arg0, %arg1, %c0_i32 : i32, i32, i32
  }
  func.func @transform_2(%arg0: i32, %arg1: i32) -> (i32, i32) {
    %c0_i32 = arith.constant 0 : i32
    %c0_i32_0 = arith.constant 0 : i32
    %c0_i32_1 = arith.constant 0 : i32
    return %c0_i32, %c0_i32_0 : i32, i32
  }
  func.func @transform_3(%arg0: i32, %arg1: i32) -> (i32, i32) {
    %c0_i32 = arith.constant 0 : i32
    %c0_i32_0 = arith.constant 0 : i32
    %c0_i32_1 = arith.constant 0 : i32
    return %c0_i32, %c0_i32_0 : i32, i32
  }
  func.func @transform_4(%arg0: i32, %arg1: i32) -> (i32, i32) {
    %c0_i32 = arith.constant 0 : i32
    %c0_i32_0 = arith.constant 0 : i32
    return %arg0, %c0_i32 : i32, i32
  }
}

</mosaic_0001>

<bundles_post_ra>
// kernel: tpu_custom_call.1
= control target key start
LH: loop header
LB: loop body
LE: loop exit
PB: predicated region body
PF: predicated region fallthrough
CT: control target
= control target key end

     0   :  { %9 = vsyncpa [#allocation3], 0  ;;  %s521_s0 = inlined_call_operand.hbm [shape: f32[2,32], index: 0, kind: input, shape index: {}]   ;;  %s522_s1 = inlined_call_operand.hbm [shape: bf16[2,8,32], index: 1, kind: input, shape index: {}]   ;;  %s523_s2 = inlined_call_operand.hbm [shape: bf16[32,32], index: 2, kind: input, shape index: {}]   ;;  %s524_s3 = inlined_call_operand.vmem [shape: f32[1,32], index: 3, kind: input, shape index: {}]   ;;  %s525_s4 = inlined_call_operand.hbm [shape: f32[2,8], index: 4, kind: output, shape index: {}]  }
   0x1   :  { %10 = vsyncpa [#allocation6], 0 }
   0x2   :  { %11 = vsyncpa [#allocation4], 0  ;;  %s420_s15 = smov [#allocation5]   ;;  %s326_s19 = scalar_lea.hbm %s522_s1, 128 }
   0x3   :  { %s27_s16 = sshll.u32 %s420_s15, 4  ;;  %p327_p0 = scmp.ne.s32.totalorder %s522_s1, %s326_s19  ;;  %s28_s16 = int_to_ptr.vmem [resolvable:$true] %s27_s16 }
   0x4   :  { %p330_p1 = scmp.lt.u32.totalorder %s326_s19, %s522_s1 }
   0x6   :  { %p332_p2 = pnand %p330_p1, %p327_p0 }
   0x8   :  { %335 = shalt.err (!%p332_p2)
}
   0x9   :  { %s336_s24 = scalar_lea.vmem %s28_s16, 128  ;;  %p341_p4 = scmp.lt.s32.totalorder %s28_s16, %s28_s16 }
   0xa   :  { %p337_p3 = scmp.ne.s32.totalorder %s28_s16, %s336_s24  ;;  %p342_p5 = scmp.lt.s32.totalorder %s336_s24, %s336_s24 }
   0xc   :  { %p343_p6 = por %p342_p5, %p341_p4 }
   0xe   :  { %p344_p7 = pnand %p343_p6, %p337_p3 }
  0x10   :  { %347 = shalt.err (!%p344_p7)
}
  0x11   :  { %s421_s25 = smov 64   ;;  %s422_s26 = smov 4  }
  0x12   :  { %33 = dma.hbm_to_vmem [thread:$0]  %s522_s1, 128, %s28_s16, [#allocation6], %s421_s25, %s421_s25, %s422_s26  }
  0x13   :  { %s423_s29 = smov [#allocation2]   ;;  %s424_s5 = smov [#allocation7]  }
  0x14   :  { %s18_s30 = sshll.u32 %s423_s29, 4  ;;  %s39_s6 = sshll.u32 %s424_s5, 4  ;;  %s19_s30 = int_to_ptr.vmem [resolvable:$true] %s18_s30  ;;  %s40_s6 = int_to_ptr.vmem [resolvable:$true] %s39_s6 }
  0x15   :  { %s348_s9 = scalar_lea.hbm %s521_s0, 32 }
  0x16   :  { %p349_p8 = scmp.ne.s32.totalorder %s521_s0, %s348_s9  ;;  %p352_p9 = scmp.lt.u32.totalorder %s348_s9, %s521_s0 }
  0x18   :  { %p354_p10 = pnand %p352_p9, %p349_p8 }
  0x1a   :  { %357 = shalt.err (!%p354_p10)
}
  0x1b   :  { %s358_s1 = scalar_lea.vmem %s19_s30, 32  ;;  %p363_p12 = scmp.lt.s32.totalorder %s19_s30, %s19_s30 }
  0x1c   :  { %p359_p11 = scmp.ne.s32.totalorder %s19_s30, %s358_s1  ;;  %p364_p13 = scmp.lt.s32.totalorder %s358_s1, %s358_s1 }
  0x1e   :  { %p365_p0 = por %p364_p13, %p363_p12 }
  0x20   :  { %p366_p1 = pnand %p365_p0, %p359_p11 }
  0x22   :  { %369 = shalt.err (!%p366_p1)
}
  0x23   :  { %21 = dma.hbm_to_vmem [thread:$0]  %s521_s0, 32, %s19_s30, [#allocation3]  }
  0x24   :  { %s370_s18 = scalar_lea.hbm %s523_s2, 256 }
  0x25   :  { %p371_p2 = scmp.ne.s32.totalorder %s523_s2, %s370_s18  ;;  %p374_p3 = scmp.lt.u32.totalorder %s370_s18, %s523_s2 }
  0x27   :  { %p376_p4 = pnand %p374_p3, %p371_p2 }
  0x29   :  { %379 = shalt.err (!%p376_p4)
}
  0x2a   :  { %s380_s23 = scalar_lea.vmem %s40_s6, 256  ;;  %p385_p6 = scmp.lt.s32.totalorder %s40_s6, %s40_s6 }
  0x2b   :  { %p381_p5 = scmp.ne.s32.totalorder %s40_s6, %s380_s23  ;;  %p386_p7 = scmp.lt.s32.totalorder %s380_s23, %s380_s23 }
  0x2d   :  { %p387_p8 = por %p386_p7, %p385_p6 }
  0x2f   :  { %p388_p9 = pnand %p387_p8, %p381_p5 }
  0x31   :  { %391 = shalt.err (!%p388_p9)
}
  0x32   :  { %45 = dma.hbm_to_vmem [thread:$0]  %s523_s2, 256, %s40_s6, [#allocation6], %s421_s25, %s421_s25, %s422_s26  }
  0x33   :  { %414 = dma.done.wait [#allocation3], 32  }
  0x34   :  { %415 = vsyncadd [#allocation3], 4294967264 }
  0x35   :  { %416 = dma.done.wait [#allocation6], 384  }
  0x36   :  { %417 = vsyncadd [#allocation6], 4294966912  ;;  %v425_v0 = vmov 0.0   ;;  %vm426_vm0 = vmmov 0   ;;  %v315_v1 = vld [vmem:[#allocation7] sm:$0xff]   ;;  %v316_v2 = vld [vmem:[#allocation7 + $0x8] sm:$0xff]   ;;  %v139_v6 = vlaneseq }
  0x37   :  { %295 = vmatprep.subr.bf16.mxu0 %v425_v0  ;;  %299 = vmatprep.mubr.msk.bf16.mxu0 %vm426_vm0, %v425_v0  ;;  %v317_v3 = vld [vmem:[#allocation5] sm:$0xff]   ;;  %vm81_vm1 = vcmask 261120   ;;  %v427_v4 = vmov 1966171168   ;;  %v291_v21 = vld [vmem:[%s524_s3] ss:$0 sm:$0xff] }
  0x38   :  { %296 = vmatpush3.bf16.msra.mxu0 %v315_v1  ;;  %v137_v5 = vunpack.c.l.s4 %v427_v4  ;;  %v140_v8 = vshrl.u32 %v139_v6, 7  ;;  %v290_v9 = vld.sshfl [vmem:[#allocation2] sm:$0x11 pattern:$0x75316420]  ;;  %v182_v30 = vand.u32 127, %v139_v6 }
  0x39   :  { %297 = vmatprep.subr.bf16.mxu0 %v425_v0  ;;  %v135_v11 = vcombine.high %v290_v9, %v290_v9  ;;  %vm191_vm2 = vcmask 1041409   ;;  %vm194_vm3 = vcmask 58368   ;;  %v428_v38 = vmov 0   ;;  %s429_s3 = smov [#allocation8]  }
  0x3a   :  { %v138_v7 = vunpack.c.0.s8 %v137_v5  ;;  %v152_v13 = vsub.s32 0, %v140_v8  ;;  %v185_v32 = vsub.s32 %v182_v30, %v140_v8  ;;  %314 = vset.pattern.permute.xlu0 %v428_v38  ;;  %313 = vset.pattern.permute.xlu1 %v428_v38  ;;  %v205_v39 = vsub.s32 1, %v140_v8  ;;  %s276_s26 = sshll.u32 %s429_s3, 4  ;;  %s277_s26 = int_to_ptr.vmem [resolvable:$true] %s276_s26 }
  0x3b   :  { %s392_s27 = scalar_lea.vmem %s277_s26, 32  ;;  %p397_p11 = scmp.lt.s32.totalorder %s277_s26, %s277_s26 }
  0x3c   :  { %298 = vmatpush3.bf16.msra.mxu0 %v316_v2  ;;  %v141_v10 = vsub.s32 %v138_v7, %v140_v8  ;;  %p393_p10 = scmp.ne.s32.totalorder %s277_s26, %s392_s27  ;;  %p398_p12 = scmp.lt.s32.totalorder %s392_s27, %s392_s27 }
  0x3e   :  { %v142_v12 = vrot.slane %v290_v9, %v141_v10  ;;  %v149_v14 = vrot.slane %v135_v11, %v141_v10  ;;  %p399_p13 = por %p398_p12, %p397_p11 }
  0x3f   :  { %300 = vmatmul.mubr.msk.bf16.vlgmr.msra.gmra.mrb[0].mxu0 %vm81_vm1, %v317_v3 }
  0x40   :  { %v153_v15 = vrot.slane %v142_v12, %v152_v13  ;;  %v157_v16 = vrot.slane %v149_v14, %v152_v13  ;;  %p400_p0 = pnand %p399_p13, %p393_p10 }
 0x112   :  { %v119_v17 = vpop.f32.mrb[0].mxu0 }
 0x113   :  { %v160_v18 = vadd.f32 %v153_v15, %v119_v17  ;;  %v301_v19 = vpop.f32.mrb[1].mxu0 }
 0x114   :  { %v122_v20 = vpop.f32.mrb[2].mxu0 }
 0x115   :  { %v162_v22 = vmax.f32 %v160_v18, 0.0  ;;  %v161_v23 = vadd.f32 %v157_v16, %v122_v20  ;;  %v302_v24 = vpop.f32.mrb[3].mxu0 }
 0x117   :  { %v163_v25 = vmax.f32 %v161_v23, 0.0  ;;  %v171_v26 = vmul.f32 %v291_v21, %v162_v22 }
 0x119   :  { %v173_v27 = vsel %vm81_vm1, %v171_v26, 0.0  ;;  %v172_v28 = vmul.f32 %v291_v21, %v163_v25 }
 0x11a   :  { %174 = vadd.xlane.f32.xlu0 %v173_v27 }
 0x11b   :  { %v176_v29 = vsel %vm81_vm1, %v172_v28, 0.0 }
 0x11e   :  { %177 = vadd.xlane.f32.xlu0 %v176_v29 }
 0x1a7   :  { %v175_v31 = vpop.xlane.xlu0 %174 }
 0x1a8   :  { %v186_v34 = vrot.slane %v175_v31, %v185_v32 }
 0x1ab   :  { %v178_v33 = vpop.xlane.xlu0 %177 }
 0x1ac   :  { %v190_v35 = vrot.slane %v178_v33, %v185_v32 }
 0x1ae   :  { %v192_v36 = vsel %vm191_vm2, %v190_v35, %v186_v34 }
 0x1af   :  { %v195_v37 = vsel %vm194_vm3, %v192_v36, -inf }
 0x1b0   :  { %196 = vmax.xlane.f32.xlu1 %v195_v37 }
 0x23d   :  { %v197_v40 = vpop.xlane.xlu1 %196 }
 0x23e   :  { %v202_v41 = vrot.slane %v197_v40, %v152_v13  ;;  %v206_v42 = vrot.slane %v197_v40, %v205_v39 }
 0x240   :  { %v209_v43 = vsub.f32 %v175_v31, %v202_v41  ;;  %v210_v44 = vsub.f32 %v178_v33, %v206_v42 }
 0x242   :  { %v211_v45 = vmul.f32 1.442695, %v209_v43  ;;  %v213_v46 = vmul.f32 1.442695, %v210_v44 }
 0x244   :  { %318 = vpow2.f32 %v211_v45 }
 0x245   :  { %320 = vpow2.f32 %v213_v46 }
 0x24e   :  { %v319_v47 = vpop.eup %318 }
 0x24f   :  { %v321_v48 = vpop.eup %320  ;;  %218 = vperm.xlu1 %313, %v319_v47  }
 0x250   :  { %221 = vperm.xlu0 %314, %v321_v48  }
 0x2ce   :  { %v219_v49 = vpop.permute.xlu1 %218 }
 0x2cf   :  { %v222_v50 = vpop.permute.xlu0 %221  ;;  %v226_v51 = vrot.slane %v219_v49, %v185_v32 }
 0x2d0   :  { %v230_v52 = vrot.slane %v222_v50, %v185_v32 }
 0x2d2   :  { %v231_v53 = vsel %vm191_vm2, %v230_v52, %v226_v51 }
 0x2d3   :  { %v233_v54 = vsel %vm194_vm3, %v231_v53, 0.0 }
 0x2d4   :  { %234 = vadd.xlane.f32.xlu1 %v233_v54 }
 0x361   :  { %v235_v55 = vpop.xlane.xlu1 %234 }
 0x362   :  { %v240_v56 = vrot.slane %v235_v55, %v152_v13  ;;  %v244_v57 = vrot.slane %v235_v55, %v205_v39 }
 0x364   :  { %322 = vrcp.f32 %v240_v56 }
 0x365   :  { %324 = vrcp.f32 %v244_v57 }
 0x36e   :  { %v323_v58 = vpop.eup %322 }
 0x36f   :  { %v248_v59 = vmul.f32 %v323_v58, %v319_v47  ;;  %v325_v60 = vpop.eup %324 }
 0x370   :  { %v250_v61 = vmul.f32 %v325_v60, %v321_v48 }
 0x371   :  { %254 = vperm.xlu0 %314, %v248_v59  }
 0x375   :  { %257 = vperm.xlu0 %314, %v250_v61  }
 0x3f0   :  { %v255_v62 = vpop.permute.xlu0 %254 }
 0x3f1   :  { %v262_v0 = vrot.slane %v255_v62, %v185_v32 }
 0x3f4   :  { %v258_v63 = vpop.permute.xlu0 %257 }
 0x3f5   :  { %v266_v1 = vrot.slane %v258_v63, %v185_v32 }
 0x3f7   :  { %v267_v2 = vsel %vm191_vm2, %v266_v1, %v262_v0 }
 0x3f8   :  { %269 = vst.msk [vmem:[#allocation8] sm:$0x3] %vm194_vm3, %v267_v2 }
 0x3f9   :  { %403 = shalt.err (!%p400_p0)
}
 0x3fa   :  { %s404_s30 = scalar_lea.hbm %s525_s4, 32 }
 0x3fb   :  { %p405_p1 = scmp.ne.s32.totalorder %s525_s4, %s404_s30  ;;  %p408_p2 = scmp.lt.u32.totalorder %s404_s30, %s525_s4 }
 0x3fd   :  { %p410_p3 = pnand %p408_p2, %p405_p1 }
 0x3ff   :  { %413 = shalt.err (!%p410_p3)
}
 0x400   :  { %279 = dma.vmem_to_hbm [thread:$0]  %s277_s26, 32, %s525_s4, [#allocation4]  }
 0x401   :  { %418 = dma.done.wait [#allocation4], 32  }
 0x402   :  { %419 = vsyncadd [#allocation4], 4294967264 }
 0x403   :  { %283 = vsyncpa [#allocation3], 1 }
 0x404   :  { %284 = vsyncpa [#allocation6], 1 }
 0x405   :  { %285 = vsyncpa [#allocation4], 1 }

</bundles_post_ra>
